<compile_context>
chip_gen: v6e
topology: v6e:2x2x1
jax: 0.10.0
libtpu: 0.0.40
codegen_flags: <defaults>
</compile_context>

<pallas_src>
import functools

import jax
import jax.numpy as jnp
from jax.experimental import pallas as pl
from jax.experimental.pallas import tpu as pltpu


LANE = 128


def _round_up(x, m):
    return (x + m - 1) // m * m


def _pick_tile(n_pad, target):
    """Largest multiple of 128 that divides n_pad and is <= target (>=128)."""
    t = max(LANE, min(int(target), n_pad))
    t -= t % LANE
    t = max(t, LANE)
    while n_pad % t:
        t -= LANE
    return t


def _vmem_capacity():
    try:
        return int(pltpu.get_tpu_info().vmem_capacity_bytes)
    except Exception:
        return 64 * 1024 * 1024  # conservative fallback (v7x-sized)


def _tiled_vmem_bytes(n_pad, f, tm, tk, resident_h):
    g = 2 * tm * tk * 2                                  # G' tile (bf16), 2 bufs
    h = (2 * n_pad * f * 2) if resident_h else (2 * tk * f * 2)
    w = 2 * (f * f * 2 + f * 4)                          # W (bf16) + b (f32)
    o = 2 * tm * f * (4 + 2)                             # f32 + bf16 out blocks
    tmp = tm * f * 4 + tk * f * 2 + tm * f * 4           # in-kernel temporaries
    return g + h + w + o + tmp


def _fused_vmem_bytes(n_pad, f):
    g = 2 * n_pad * n_pad * 2
    h = 2 * n_pad * f * 2
    w = 2 * 3 * (f * f * 2 + f * 4)
    o = 2 * 3 * n_pad * f * 4
    tmp = 8 * n_pad * f * 4
    return g + h + w + o + tmp


# ---------------------------------------------------------------------------
# Tiled per-layer kernel (large graphs):  leaky_relu((G' @ h) @ W + b)
# ---------------------------------------------------------------------------
def _layer_kernel(g_ref, h_ref, w_ref, b_ref, *out_refs, resident_h, emit_bf16):
    o32_ref = out_refs[0]
    k = pl.program_id(1)
    tk = g_ref.shape[1]

    @pl.when(k == 0)
    def _():
        o32_ref[...] = jnp.zeros_like(o32_ref)

    if resident_h:
        start = pl.multiple_of(k * tk, LANE)
        h_tile = h_ref[pl.ds(start, tk), :]
    else:
        h_tile = h_ref[...]

    # Dominant cost: bf16 x bf16 G'@h tile on the MXU, f32 accumulate directly
    # into the resident output block.
    o32_ref[...] += jnp.dot(g_ref[...], h_tile,
                            preferred_element_type=jnp.float32)

    @pl.when(k == pl.num_programs(1) - 1)
    def _():
        # TODO(synk): F.dropout(p=0.1) in the reference is stochastic; treated
        # as identity (inference semantics) here.
        z = jnp.dot(o32_ref[...].astype(jnp.bfloat16), w_ref[...],
                    preferred_element_type=jnp.float32) + b_ref[...]
        y = jnp.maximum(z, 0.2 * z)          # leaky_relu(negative_slope=0.2)
        o32_ref[...] = y
        if emit_bf16:
            out_refs[1][...] = y.astype(jnp.bfloat16)


def _hg_fc_layer(g_bf16, h_bf16, w_bf16, b_f32, *, tm, tk, resident_h,
                 emit_bf16, vmem_limit):
    n_pad = g_bf16.shape[0]
    f = w_bf16.shape[1]
    grid = (n_pad // tm, n_pad // tk)

    if resident_h:
        h_spec = pl.BlockSpec((n_pad, f), lambda i, k: (0, 0))   # VMEM-resident
    else:
        h_spec = pl.BlockSpec((tk, f), lambda i, k: (k, 0))      # streamed

    out_shape = [jax.ShapeDtypeStruct((n_pad, f), jnp.float32)]
    out_specs = [pl.BlockSpec((tm, f), lambda i, k: (i, 0))]
    if emit_bf16:
        out_shape.append(jax.ShapeDtypeStruct((n_pad, f), jnp.bfloat16))
        out_specs.append(pl.BlockSpec((tm, f), lambda i, k: (i, 0)))

    kernel = functools.partial(_layer_kernel, resident_h=resident_h,
                               emit_bf16=emit_bf16)
    outs = pl.pallas_call(
        kernel,
        out_shape=tuple(out_shape),
        grid_spec=pltpu.PrefetchScalarGridSpec(
            num_scalar_prefetch=0,
            grid=grid,
            in_specs=[
                pl.BlockSpec((tm, tk), lambda i, k: (i, k)),   # G' (bf16)
                h_spec,                                        # h  (bf16)
                pl.BlockSpec((f, f), lambda i, k: (0, 0)),     # W  (bf16)
                pl.BlockSpec((1, f), lambda i, k: (0, 0)),     # b  (f32)
            ],
            out_specs=tuple(out_specs),
        ),
        compiler_params=pltpu.CompilerParams(
            dimension_semantics=("parallel", "arbitrary"),
            vmem_limit_bytes=vmem_limit,
        ),
    )(g_bf16, h_bf16, w_bf16, b_f32)
    if emit_bf16:
        return outs[0], outs[1]
    return outs[0]


# ---------------------------------------------------------------------------
# Fused 3-layer kernel (small graphs): G' resident, read from HBM once.
# ---------------------------------------------------------------------------
def _fused_kernel(g_ref, h0_ref, w1_ref, b1_ref, w2_ref, b2_ref, w3_ref, b3_ref,
                  o1_ref, o2_ref, o3_ref):
    g = g_ref[...]

    def layer(h_bf, w_ref, b_ref):
        m = jnp.dot(g, h_bf, preferred_element_type=jnp.float32)
        z = jnp.dot(m.astype(jnp.bfloat16), w_ref[...],
                    preferred_element_type=jnp.float32) + b_ref[...]
        return jnp.maximum(z, 0.2 * z)

    x1 = layer(h0_ref[...], w1_ref, b1_ref)
    o1_ref[...] = x1
    x2 = layer(x1.astype(jnp.bfloat16), w2_ref, b2_ref)
    o2_ref[...] = x2
    x3 = layer(x2.astype(jnp.bfloat16), w3_ref, b3_ref)
    o3_ref[...] = x3


def _fused_layers(p, h0_bf):
    n_pad, f = p["n_pad"], p["f_pad"]

    def full(shape):
        return pl.BlockSpec(shape, lambda i: (0,) * len(shape))

    return pl.pallas_call(
        _fused_kernel,
        out_shape=tuple(jax.ShapeDtypeStruct((n_pad, f), jnp.float32)
                        for _ in range(3)),
        grid_spec=pltpu.PrefetchScalarGridSpec(
            num_scalar_prefetch=0,
            grid=(1,),
            in_specs=[
                full((n_pad, n_pad)),                    # G' (bf16)
                full((n_pad, f)),                        # h0 (bf16)
                full((f, f)), full((1, f)),              # W1, b1
                full((f, f)), full((1, f)),              # W2, b2
                full((f, f)), full((1, f)),              # W3, b3
            ],
            out_specs=tuple(full((n_pad, f)) for _ in range(3)),
        ),
        compiler_params=pltpu.CompilerParams(
            dimension_semantics=("arbitrary",),
            vmem_limit_bytes=p["fused_vmem_limit"],
        ),
    )(p["g"], h0_bf, p["w1"], p["b1"], p["w2"], p["b2"], p["w3"], p["b3"])


# ---------------------------------------------------------------------------
# Parameter prep + forward
# ---------------------------------------------------------------------------
def prepare_dhcf3_params(G, embed_w, w1, b1, w2, b2, w3, b3,
                         *, row_tile_target=1024, k_tile_target=2048):
    """One-time prep: fold residual into G, bf16 casts, transpose + padding."""
    N = G.shape[0]
    hid = embed_w.shape[1]
    i_emb = w3.shape[0]
    n_pad = _round_up(N, LANE)
    f_pad = _round_up(max(hid, i_emb), LANE)
    cap = _vmem_capacity()

    # Residual folded in: G' = G + I  (so the kernels compute G'@h = G@h + h).
    g_res = G.astype(jnp.float32) + jnp.eye(N, dtype=jnp.float32)
    g_pad = jnp.zeros((n_pad, n_pad), jnp.bfloat16)
    g_pad = g_pad.at[:N, :N].set(g_res.astype(jnp.bfloat16))

    def pad_w(w):  # torch (out, in) -> padded (in_pad, out_pad), bf16
        out_d, in_d = w.shape
        wp = jnp.zeros((f_pad, f_pad), jnp.bfloat16)
        return wp.at[:in_d, :out_d].set(w.T.astype(jnp.bfloat16))

    def pad_b(b):
        return jnp.zeros((1, f_pad), jnp.float32).at[0, :b.shape[0]].set(
            b.astype(jnp.float32))

    embed_f32 = embed_w.astype(jnp.float32)                       # (in_ch, hid)
    embed_bf = jnp.zeros((embed_w.shape[0], f_pad), jnp.bfloat16)
    embed_bf = embed_bf.at[:, :hid].set(embed_w.astype(jnp.bfloat16))

    # Tile selection, budgeted against actual VMEM capacity (64 MiB on v7x).
    tm = _pick_tile(n_pad, row_tile_target)
    if n_pad >= 2 * LANE and n_pad // tm < 2:
        tm = _pick_tile(n_pad, n_pad // 2)   # >=2 row blocks (v7x: 2 TCs)
    tk = _pick_tile(n_pad, k_tile_target)

    resident_h = (2 * 2 * n_pad * f_pad) <= int(0.25 * cap)
    budget = int(0.55 * cap)
    while _tiled_vmem_bytes(n_pad, f_pad, tm, tk, resident_h) > budget and tk > LANE:
        tk = _pick_tile(n_pad, tk // 2)
    while _tiled_vmem_bytes(n_pad, f_pad, tm, tk, resident_h) > budget and tm > LANE:
        tm = _pick_tile(n_pad, tm // 2)

    tiled_est = _tiled_vmem_bytes(n_pad, f_pad, tm, tk, resident_h)
    tiled_vmem_limit = int(min(0.85 * cap, max(32 << 20, 2 * tiled_est)))

    fused_est = _fused_vmem_bytes(n_pad, f_pad)
    use_fused = fused_est <= int(0.55 * cap)
    fused_vmem_limit = int(min(0.85 * cap, max(32 << 20, 2 * fused_est)))

    return dict(
        g=g_pad, embed_f32=embed_f32, embed_bf=embed_bf,
        w1=pad_w(w1), b1=pad_b(b1),
        w2=pad_w(w2), b2=pad_b(b2),
        w3=pad_w(w3), b3=pad_b(b3),
        n=N, n_pad=n_pad, hid=hid, i_emb=i_emb, f_pad=f_pad,
        tm=tm, tk=tk, resident_h=resident_h,
        tiled_vmem_limit=tiled_vmem_limit,
        use_fused=use_fused, fused_vmem_limit=fused_vmem_limit,
    )


def dhcf3_forward(idx, params, *, use_fused=None):
    p = params
    if use_fused is None:
        use_fused = p["use_fused"]
    N, n_pad, hid, i_emb, f_pad = p["n"], p["n_pad"], p["hid"], p["i_emb"], p["f_pad"]

    # Embedding gather (plain-JAX glue). Single fused pad-and-cast for h0.
    x0 = p["embed_f32"][idx]                                       # (N, hid) f32
    h0_bf = jnp.zeros((n_pad, f_pad), jnp.bfloat16).at[:N].set(p["embed_bf"][idx])

    if use_fused:
        x1, x2, x3 = _fused_layers(p, h0_bf)
    else:
        kw = dict(tm=p["tm"], tk=p["tk"], resident_h=p["resident_h"],
                  vmem_limit=p["tiled_vmem_limit"])
        x1, x1_bf = _hg_fc_layer(p["g"], h0_bf, p["w1"], p["b1"],
                                 emit_bf16=True, **kw)
        x2, x2_bf = _hg_fc_layer(p["g"], x1_bf, p["w2"], p["b2"],
                                 emit_bf16=True, **kw)
        x3 = _hg_fc_layer(p["g"], x2_bf, p["w3"], p["b3"],
                          emit_bf16=False, **kw)

    return jnp.concatenate(
        [x0, x1[:N, :hid], x2[:N, :hid], x3[:N, :i_emb]], axis=1)


# ---------------------------------------------------------------------------
# Helpers for the demo
# ---------------------------------------------------------------------------
def _xavier_uniform(key, shape):
    # torch.nn.init.xavier_uniform_ for a 2D weight (fan_out, fan_in)
    fan_out, fan_in = shape
    bound = (6.0 / (fan_in + fan_out)) ** 0.5
    return jax.random.uniform(key, shape, jnp.float32, -bound, bound)


def _reference_forward(idx, G, embed_w, w1, b1, w2, b2, w3, b3):
    """Plain-JAX f32 reference of the PyTorch forward (dropout = identity)."""
    x = embed_w[idx]

    def layer(h, w, b):
        m = G @ h + h
        z = m @ w.T + b
        return jnp.maximum(z, 0.2 * z)

    x1 = layer(x, w1, b1)
    x2 = layer(x1, w2, b2)
    x3 = layer(x2, w3, b3)
    return jnp.concatenate([x, x1, x2, x3], axis=1)


if __name__ == "__main__":
    # Small shapes consistent with the module's forward.
    in_ch, hid_ch, i_emb, N = 10, 32, 16, 8

    key = jax.random.PRNGKey(0)
    k_emb, k_w1, k_w2, k_w3, k_idx, k_g = jax.random.split(key, 6)

    embed_w = _xavier_uniform(k_emb, (in_ch, hid_ch))   # Embedding(in_ch, hid)
    w1 = _xavier_uniform(k_w1, (hid_ch, hid_ch))        # fc1: Linear(hid, hid)
    b1 = jnp.zeros((hid_ch,), jnp.float32)
    w2 = _xavier_uniform(k_w2, (hid_ch, hid_ch))        # fc2: Linear(hid, hid)
    b2 = jnp.zeros((hid_ch,), jnp.float32)
    w3 = _xavier_uniform(k_w3, (i_emb, hid_ch))         # fc3: Linear(hid, i_emb)
    b3 = jnp.zeros((i_emb,), jnp.float32)

    idx = jax.random.randint(k_idx, (N,), 0, in_ch, dtype=jnp.int32)
    G = jax.random.uniform(k_g, (N, N), jnp.float32)

    params = prepare_dhcf3_params(G, embed_w, w1, b1, w2, b2, w3, b3)

    # Run both code paths (fused small-graph kernel + tiled per-layer kernels).
    out_fused = dhcf3_forward(idx, params, use_fused=True)
    out_tiled = dhcf3_forward(idx, params, use_fused=False)
    jax.block_until_ready((out_fused, out_tiled))

    assert out_fused.shape == (N, 3 * hid_ch + i_emb), out_fused.shape
    assert out_fused.dtype == jnp.float32
    assert out_tiled.shape == out_fused.shape

    # The two kernel paths perform the same bf16 arithmetic -> must agree.
    assert bool(jnp.allclose(out_fused, out_tiled, rtol=1e-2, atol=1e-2))

    # Match the f32 reference at bf16-level tolerance.
    ref = _reference_forward(idx, G, embed_w, w1, b1, w2, b2, w3, b3)
    assert bool(jnp.allclose(out_fused, ref, rtol=1e-1, atol=1e-1))

    print("KERNEL_OK")
</pallas_src>

<mosaic_0001>
module attributes {stable_mosaic.version = 11 : i64} {
  func.func @_fused_kernel(%arg0: i32, %arg1: memref<128x128xbf16, #tpu.memory_space<vmem>>, %arg2: memref<128x128xbf16, #tpu.memory_space<vmem>>, %arg3: memref<128x128xbf16, #tpu.memory_space<vmem>>, %arg4: memref<1x128xf32, #tpu.memory_space<vmem>>, %arg5: memref<128x128xbf16, #tpu.memory_space<vmem>>, %arg6: memref<1x128xf32, #tpu.memory_space<vmem>>, %arg7: memref<128x128xbf16, #tpu.memory_space<vmem>>, %arg8: memref<1x128xf32, #tpu.memory_space<vmem>>, %arg9: memref<128x128xf32, #tpu.memory_space<vmem>>, %arg10: memref<128x128xf32, #tpu.memory_space<vmem>>, %arg11: memref<128x128xf32, #tpu.memory_space<vmem>>) attributes {dimension_semantics = [#tpu.dimension_semantics<arbitrary>], iteration_bounds = array<i64: 1>, scalar_prefetch = 0 : i64, scratch_operands = 0 : i64, tpu.core_type = #tpu.core_type<tc>, window_params = [{pipeline_mode = #tpu.pipeline_mode<synchronous>, transform_indices = @transform_0, window_bounds = array<i64: 128, 128>}, {pipeline_mode = #tpu.pipeline_mode<synchronous>, transform_indices = @transform_1, window_bounds = array<i64: 128, 128>}, {pipeline_mode = #tpu.pipeline_mode<synchronous>, transform_indices = @transform_2, window_bounds = array<i64: 128, 128>}, {pipeline_mode = #tpu.pipeline_mode<synchronous>, transform_indices = @transform_3, window_bounds = array<i64: 1, 128>}, {pipeline_mode = #tpu.pipeline_mode<synchronous>, transform_indices = @transform_4, window_bounds = array<i64: 128, 128>}, {pipeline_mode = #tpu.pipeline_mode<synchronous>, transform_indices = @transform_5, window_bounds = array<i64: 1, 128>}, {pipeline_mode = #tpu.pipeline_mode<synchronous>, transform_indices = @transform_6, window_bounds = array<i64: 128, 128>}, {pipeline_mode = #tpu.pipeline_mode<synchronous>, transform_indices = @transform_7, window_bounds = array<i64: 1, 128>}, {pipeline_mode = #tpu.pipeline_mode<synchronous>, transform_indices = @transform_8, window_bounds = array<i64: 128, 128>}, {pipeline_mode = #tpu.pipeline_mode<synchronous>, transform_indices = @transform_9, window_bounds = array<i64: 128, 128>}, {pipeline_mode = #tpu.pipeline_mode<synchronous>, transform_indices = @transform_10, window_bounds = array<i64: 128, 128>}]} {
    %c0 = arith.constant 0 : index
    %c0_0 = arith.constant 0 : index
    %0 = vector.load %arg1[%c0, %c0_0] : memref<128x128xbf16, #tpu.memory_space<vmem>>, vector<128x128xbf16>
    %c0_1 = arith.constant 0 : index
    %c0_2 = arith.constant 0 : index
    %1 = vector.load %arg2[%c0_1, %c0_2] : memref<128x128xbf16, #tpu.memory_space<vmem>>, vector<128x128xbf16>
    %cst = arith.constant dense<0.000000e+00> : vector<128x128xf32>
    %2 = tpu.matmul %0, %1, %cst {dimension_numbers = #tpu.dot_dimension_numbers<[1], [0], [0], [1], [0, 0, 1, 1], [], []>} : vector<128x128xbf16>, vector<128x128xbf16>, vector<128x128xf32> -> vector<128x128xf32>
    %3 = arith.truncf %2 : vector<128x128xf32> to vector<128x128xbf16>
    %c0_3 = arith.constant 0 : index
    %c0_4 = arith.constant 0 : index
    %4 = vector.load %arg3[%c0_3, %c0_4] : memref<128x128xbf16, #tpu.memory_space<vmem>>, vector<128x128xbf16>
    %cst_5 = arith.constant dense<0.000000e+00> : vector<128x128xf32>
    %5 = tpu.matmul %3, %4, %cst_5 {dimension_numbers = #tpu.dot_dimension_numbers<[1], [0], [0], [1], [0, 0, 1, 1], [], []>} : vector<128x128xbf16>, vector<128x128xbf16>, vector<128x128xf32> -> vector<128x128xf32>
    %c0_6 = arith.constant 0 : index
    %c0_7 = arith.constant 0 : index
    %6 = vector.load %arg4[%c0_6, %c0_7] : memref<1x128xf32, #tpu.memory_space<vmem>>, vector<1x128xf32>
    %7 = vector.broadcast %6 : vector<1x128xf32> to vector<128x128xf32>
    %8 = arith.addf %5, %7 : vector<128x128xf32>
    %cst_8 = arith.constant 2.000000e-01 : f32
    %9 = vector.broadcast %cst_8 : f32 to vector<128x128xf32>
    %10 = arith.mulf %9, %8 : vector<128x128xf32>
    %11 = arith.maximumf %8, %10 : vector<128x128xf32>
    %c0_9 = arith.constant 0 : index
    %c0_10 = arith.constant 0 : index
    %12 = vector.load %arg9[%c0_9, %c0_10] : memref<128x128xf32, #tpu.memory_space<vmem>>, vector<128x128xf32>
    tpu.vector_store %arg9[%c0_9, %c0_10], %11 {strides = array<i32>} : memref<128x128xf32, #tpu.memory_space<vmem>>, vector<128x128xf32>,
    %13 = arith.truncf %11 : vector<128x128xf32> to vector<128x128xbf16>
    %cst_11 = arith.constant dense<0.000000e+00> : vector<128x128xf32>
    %14 = tpu.matmul %0, %13, %cst_11 {dimension_numbers = #tpu.dot_dimension_numbers<[1], [0], [0], [1], [0, 0, 1, 1], [], []>} : vector<128x128xbf16>, vector<128x128xbf16>, vector<128x128xf32> -> vector<128x128xf32>
    %15 = arith.truncf %14 : vector<128x128xf32> to vector<128x128xbf16>
    %c0_12 = arith.constant 0 : index
    %c0_13 = arith.constant 0 : index
    %16 = vector.load %arg5[%c0_12, %c0_13] : memref<128x128xbf16, #tpu.memory_space<vmem>>, vector<128x128xbf16>
    %cst_14 = arith.constant dense<0.000000e+00> : vector<128x128xf32>
    %17 = tpu.matmul %15, %16, %cst_14 {dimension_numbers = #tpu.dot_dimension_numbers<[1], [0], [0], [1], [0, 0, 1, 1], [], []>} : vector<128x128xbf16>, vector<128x128xbf16>, vector<128x128xf32> -> vector<128x128xf32>
    %c0_15 = arith.constant 0 : index
    %c0_16 = arith.constant 0 : index
    %18 = vector.load %arg6[%c0_15, %c0_16] : memref<1x128xf32, #tpu.memory_space<vmem>>, vector<1x128xf32>
    %19 = vector.broadcast %18 : vector<1x128xf32> to vector<128x128xf32>
    %20 = arith.addf %17, %19 : vector<128x128xf32>
    %cst_17 = arith.constant 2.000000e-01 : f32
    %21 = vector.broadcast %cst_17 : f32 to vector<128x128xf32>
    %22 = arith.mulf %21, %20 : vector<128x128xf32>
    %23 = arith.maximumf %20, %22 : vector<128x128xf32>
    %c0_18 = arith.constant 0 : index
    %c0_19 = arith.constant 0 : index
    %24 = vector.load %arg10[%c0_18, %c0_19] : memref<128x128xf32, #tpu.memory_space<vmem>>, vector<128x128xf32>
    tpu.vector_store %arg10[%c0_18, %c0_19], %23 {strides = array<i32>} : memref<128x128xf32, #tpu.memory_space<vmem>>, vector<128x128xf32>,
    %25 = arith.truncf %23 : vector<128x128xf32> to vector<128x128xbf16>
    %cst_20 = arith.constant dense<0.000000e+00> : vector<128x128xf32>
    %26 = tpu.matmul %0, %25, %cst_20 {dimension_numbers = #tpu.dot_dimension_numbers<[1], [0], [0], [1], [0, 0, 1, 1], [], []>} : vector<128x128xbf16>, vector<128x128xbf16>, vector<128x128xf32> -> vector<128x128xf32>
    %27 = arith.truncf %26 : vector<128x128xf32> to vector<128x128xbf16>
    %c0_21 = arith.constant 0 : index
    %c0_22 = arith.constant 0 : index
    %28 = vector.load %arg7[%c0_21, %c0_22] : memref<128x128xbf16, #tpu.memory_space<vmem>>, vector<128x128xbf16>
    %cst_23 = arith.constant dense<0.000000e+00> : vector<128x128xf32>
    %29 = tpu.matmul %27, %28, %cst_23 {dimension_numbers = #tpu.dot_dimension_numbers<[1], [0], [0], [1], [0, 0, 1, 1], [], []>} : vector<128x128xbf16>, vector<128x128xbf16>, vector<128x128xf32> -> vector<128x128xf32>
    %c0_24 = arith.constant 0 : index
    %c0_25 = arith.constant 0 : index
    %30 = vector.load %arg8[%c0_24, %c0_25] : memref<1x128xf32, #tpu.memory_space<vmem>>, vector<1x128xf32>
    %31 = vector.broadcast %30 : vector<1x128xf32> to vector<128x128xf32>
    %32 = arith.addf %29, %31 : vector<128x128xf32>
    %cst_26 = arith.constant 2.000000e-01 : f32
    %33 = vector.broadcast %cst_26 : f32 to vector<128x128xf32>
    %34 = arith.mulf %33, %32 : vector<128x128xf32>
    %35 = arith.maximumf %32, %34 : vector<128x128xf32>
    %c0_27 = arith.constant 0 : index
    %c0_28 = arith.constant 0 : index
    %36 = vector.load %arg11[%c0_27, %c0_28] : memref<128x128xf32, #tpu.memory_space<vmem>>, vector<128x128xf32>
    tpu.vector_store %arg11[%c0_27, %c0_28], %35 {strides = array<i32>} : memref<128x128xf32, #tpu.memory_space<vmem>>, vector<128x128xf32>,
    return
  }
  func.func @transform_0(%arg0: i32) -> (i32, i32) {
    %c0_i32 = arith.constant 0 : i32
    %c0_i32_0 = arith.constant 0 : i32
    %c0_i32_1 = arith.constant 0 : i32
    return %c0_i32, %c0_i32_0 : i32, i32
  }
  func.func @transform_1(%arg0: i32) -> (i32, i32) {
    %c0_i32 = arith.constant 0 : i32
    %c0_i32_0 = arith.constant 0 : i32
    %c0_i32_1 = arith.constant 0 : i32
    return %c0_i32, %c0_i32_0 : i32, i32
  }
  func.func @transform_2(%arg0: i32) -> (i32, i32) {
    %c0_i32 = arith.constant 0 : i32
    %c0_i32_0 = arith.constant 0 : i32
    %c0_i32_1 = arith.constant 0 : i32
    return %c0_i32, %c0_i32_0 : i32, i32
  }
  func.func @transform_3(%arg0: i32) -> (i32, i32) {
    %c0_i32 = arith.constant 0 : i32
    %c0_i32_0 = arith.constant 0 : i32
    %c0_i32_1 = arith.constant 0 : i32
    return %c0_i32, %c0_i32_0 : i32, i32
  }
  func.func @transform_4(%arg0: i32) -> (i32, i32) {
    %c0_i32 = arith.constant 0 : i32
    %c0_i32_0 = arith.constant 0 : i32
    %c0_i32_1 = arith.constant 0 : i32
    return %c0_i32, %c0_i32_0 : i32, i32
  }
  func.func @transform_5(%arg0: i32) -> (i32, i32) {
    %c0_i32 = arith.constant 0 : i32
    %c0_i32_0 = arith.constant 0 : i32
    %c0_i32_1 = arith.constant 0 : i32
    return %c0_i32, %c0_i32_0 : i32, i32
  }
  func.func @transform_6(%arg0: i32) -> (i32, i32) {
    %c0_i32 = arith.constant 0 : i32
    %c0_i32_0 = arith.constant 0 : i32
    %c0_i32_1 = arith.constant 0 : i32
    return %c0_i32, %c0_i32_0 : i32, i32
  }
  func.func @transform_7(%arg0: i32) -> (i32, i32) {
    %c0_i32 = arith.constant 0 : i32
    %c0_i32_0 = arith.constant 0 : i32
    %c0_i32_1 = arith.constant 0 : i32
    return %c0_i32, %c0_i32_0 : i32, i32
  }
  func.func @transform_8(%arg0: i32) -> (i32, i32) {
    %c0_i32 = arith.constant 0 : i32
    %c0_i32_0 = arith.constant 0 : i32
    %c0_i32_1 = arith.constant 0 : i32
    return %c0_i32, %c0_i32_0 : i32, i32
  }
  func.func @transform_9(%arg0: i32) -> (i32, i32) {
    %c0_i32 = arith.constant 0 : i32
    %c0_i32_0 = arith.constant 0 : i32
    %c0_i32_1 = arith.constant 0 : i32
    return %c0_i32, %c0_i32_0 : i32, i32
  }
  func.func @transform_10(%arg0: i32) -> (i32, i32) {
    %c0_i32 = arith.constant 0 : i32
    %c0_i32_0 = arith.constant 0 : i32
    %c0_i32_1 = arith.constant 0 : i32
    return %c0_i32, %c0_i32_0 : i32, i32
  }
}

</mosaic_0001>

<bundles_post_ra>
// kernel: tpu_custom_call.1
= control target key start
LH: loop header
LB: loop body
LE: loop exit
PB: predicated region body
PF: predicated region fallthrough
CT: control target
= control target key end

     0   :  { %16 = vsyncpa [#allocation3], 0  ;;  %s2079_s0 = inlined_call_operand.hbm [shape: bf16[128,128], index: 0, kind: input, shape index: {}]   ;;  %s2080_s1 = inlined_call_operand.hbm [shape: bf16[128,128], index: 1, kind: input, shape index: {}]   ;;  %s2081_s2 = inlined_call_operand.hbm [shape: bf16[128,128], index: 2, kind: input, shape index: {}]   ;;  %s2082_s3 = inlined_call_operand.vmem [shape: f32[1,128], index: 3, kind: input, shape index: {}]   ;;  %s2083_s4 = inlined_call_operand.hbm [shape: bf16[128,128], index: 4, kind: input, shape index: {}]   ;;  %s2084_s5 = inlined_call_operand.vmem [shape: f32[1,128], index: 5, kind: input, shape index: {}]   ;;  %s2085_s6 = inlined_call_operand.hbm [shape: bf16[128,128], index: 6, kind: input, shape index: {}]   ;;  %s2086_s7 = inlined_call_operand.vmem [shape: f32[1,128], index: 7, kind: input, shape index: {}]   ;;  %s2087_s8 = inlined_call_operand.hbm [shape: f32[128,128], index: 8, kind: output, shape index: {0}]   ;;  %s2088_s9 = inlined_call_operand.hbm [shape: f32[128,128], index: 9, kind: output, shape index: {1}]   ;;  %s2089_s10 = inlined_call_operand.hbm [shape: f32[128,128], index: 10, kind: output, shape index: {2}]  }
   0x1   :  { %17 = vsyncpa [#allocation6], 0 }
   0x2   :  { %18 = vsyncpa [#allocation9], 0 }
   0x3   :  { %19 = vsyncpa [#allocation4], 0 }
   0x4   :  { %20 = vsyncpa [#allocation13], 0  ;;  %s1813_s13 = smov [#allocation5]   ;;  %s1814_s15 = smov [#allocation8]  }
   0x5   :  { %s38_s14 = sshll.u32 %s1813_s13, 4  ;;  %s64_s16 = sshll.u32 %s1814_s15, 4  ;;  %s39_s14 = int_to_ptr.vmem [resolvable:$true] %s38_s14  ;;  %s65_s16 = int_to_ptr.vmem [resolvable:$true] %s64_s16 }
   0x6   :  { %s1651_s17 = scalar_lea.vmem %s39_s14, 1024  ;;  %p1656_p1 = scmp.lt.s32.totalorder %s39_s14, %s39_s14 }
   0x7   :  { %p1652_p0 = scmp.ne.s32.totalorder %s39_s14, %s1651_s17  ;;  %p1657_p2 = scmp.lt.s32.totalorder %s1651_s17, %s1651_s17 }
   0x9   :  { %p1658_p3 = por %p1657_p2, %p1656_p1 }
   0xb   :  { %p1659_p4 = pnand %p1658_p3, %p1652_p0 }
   0xd   :  { %1662 = shalt.err (!%p1659_p4)
}
   0xe   :  { %s1815_s18 = smov 64   ;;  %s1816_s19 = smov 4  }
   0xf   :  { %44 = dma.hbm_to_vmem [thread:$0]  %s2080_s1, 1024, %s39_s14, [#allocation6], %s1815_s18, %s1815_s18, %s1816_s19  }
  0x10   :  { %s1671_s22 = scalar_lea.vmem %s65_s16, 1024  ;;  %p1676_p6 = scmp.lt.s32.totalorder %s65_s16, %s65_s16 }
  0x11   :  { %p1672_p5 = scmp.ne.s32.totalorder %s65_s16, %s1671_s22  ;;  %p1677_p7 = scmp.lt.s32.totalorder %s1671_s22, %s1671_s22 }
  0x13   :  { %p1678_p8 = por %p1677_p7, %p1676_p6 }
  0x15   :  { %p1679_p9 = pnand %p1678_p8, %p1672_p5 }
  0x17   :  { %1682 = shalt.err (!%p1679_p9)
}
  0x18   :  { %70 = dma.hbm_to_vmem [thread:$0]  %s2083_s4, 1024, %s65_s16, [#allocation9], %s1815_s18, %s1815_s18, %s1816_s19  }
  0x19   :  { %s1817_s25 = smov [#allocation2]   ;;  %s1818_s27 = smov [#allocation7]  }
  0x1a   :  { %s26_s26 = sshll.u32 %s1817_s25, 4  ;;  %s50_s28 = sshll.u32 %s1818_s27, 4  ;;  %s27_s26 = int_to_ptr.vmem [resolvable:$true] %s26_s26  ;;  %s51_s28 = int_to_ptr.vmem [resolvable:$true] %s50_s28 }
  0x1b   :  { %s1691_s1 = scalar_lea.vmem %s27_s26, 1024  ;;  %p1696_p11 = scmp.lt.s32.totalorder %s27_s26, %s27_s26 }
  0x1c   :  { %p1692_p10 = scmp.ne.s32.totalorder %s27_s26, %s1691_s1  ;;  %p1697_p12 = scmp.lt.s32.totalorder %s1691_s1, %s1691_s1 }
  0x1e   :  { %p1698_p13 = por %p1697_p12, %p1696_p11 }
  0x20   :  { %p1699_p0 = pnand %p1698_p13, %p1692_p10 }
  0x22   :  { %1702 = shalt.err (!%p1699_p0)
}
  0x23   :  { %32 = dma.hbm_to_vmem [thread:$0]  %s2079_s0, 1024, %s27_s26, [#allocation3], %s1815_s18, %s1815_s18, %s1816_s19  }
  0x24   :  { %s1711_s4 = scalar_lea.vmem %s51_s28, 1024  ;;  %p1716_p2 = scmp.lt.s32.totalorder %s51_s28, %s51_s28 }
  0x25   :  { %p1712_p1 = scmp.ne.s32.totalorder %s51_s28, %s1711_s4  ;;  %p1717_p3 = scmp.lt.s32.totalorder %s1711_s4, %s1711_s4 }
  0x27   :  { %p1718_p4 = por %p1717_p3, %p1716_p2 }
  0x29   :  { %p1719_p5 = pnand %p1718_p4, %p1712_p1 }
  0x2b   :  { %1722 = shalt.err (!%p1719_p5)
}
  0x2c   :  { %56 = dma.hbm_to_vmem [thread:$0]  %s2081_s2, 1024, %s51_s28, [#allocation6], %s1815_s18, %s1815_s18, %s1816_s19  }
  0x2d   :  { %s1819_s13 = smov [#allocation10]  }
  0x2e   :  { %s78_s14 = sshll.u32 %s1819_s13, 4  ;;  %s79_s14 = int_to_ptr.vmem [resolvable:$true] %s78_s14 }
  0x2f   :  { %s1731_s15 = scalar_lea.vmem %s79_s14, 1024  ;;  %p1736_p7 = scmp.lt.s32.totalorder %s79_s14, %s79_s14 }
  0x30   :  { %p1732_p6 = scmp.ne.s32.totalorder %s79_s14, %s1731_s15  ;;  %p1737_p8 = scmp.lt.s32.totalorder %s1731_s15, %s1731_s15 }
  0x32   :  { %p1738_p9 = por %p1737_p8, %p1736_p7 }
  0x34   :  { %p1739_p10 = pnand %p1738_p9, %p1732_p6 }
  0x36   :  { %1742 = shalt.err (!%p1739_p10)
}
  0x37   :  { %84 = dma.hbm_to_vmem [thread:$0]  %s2085_s6, 1024, %s79_s14, [#allocation9], %s1815_s18, %s1815_s18, %s1816_s19  }
  0x38   :  { %1803 = dma.done.wait [#allocation3], 1024  }
  0x39   :  { %1804 = vsyncadd [#allocation3], 4294966272 }
  0x3a   :  { %1805 = dma.done.wait [#allocation6], 2048  }
  0x3b   :  { %1806 = vsyncadd [#allocation6], 4294965248 }
  0x3c   :  { %1807 = dma.done.wait [#allocation9], 2048  }
  0x3d   :  { %1808 = vsyncadd [#allocation9], 4294965248  ;;  %v1603_v0 = vld [vmem:[#allocation5 + $0x38] sm:$0xff]   ;;  %v1604_v1 = vld [vmem:[#allocation5 + $0x30] sm:$0xff]   ;;  %s1821_s19 = smov [#allocation11]  }
  0x3e   :  { %1399 = vmatprep.subr.bf16.mxu0 %v1603_v0  ;;  %v1605_v2 = vld [vmem:[#allocation5 + $0x28] sm:$0xff]   ;;  %v1606_v3 = vld [vmem:[#allocation5 + $0x20] sm:$0xff]   ;;  %v1607_v5 = vld [vmem:[#allocation5 + $0x18] sm:$0xff]   ;;  %s1215_s20 = sshll.u32 %s1821_s19, 4  ;;  %s1216_s20 = int_to_ptr.vmem [resolvable:$true] %s1215_s20 }
  0x3f   :  { %1400 = vmatpush3.bf16.msra.mxu0 %v1603_v0  ;;  %v1910_v4 = vld [vmem:[#allocation2] sm:$0xff]   ;;  %v1608_v6 = vld [vmem:[#allocation5 + $0x10] sm:$0xff]   ;;  %v1619_v7 = vld [vmem:[#allocation7 + $0x38] sm:$0xff]  }
  0x40   :  { %1401 = vmatprep.subr.bf16.mxu0 %v1604_v1  ;;  %1415 = vmatprep.mubr.bf16.mxu0 %v1910_v4  ;;  %v1620_v8 = vld [vmem:[#allocation7 + $0x30] sm:$0xff]   ;;  %v1609_v9 = vld [vmem:[#allocation5 + $0x8] sm:$0xff]   ;;  %v1610_v11 = vld [vmem:[#allocation5] sm:$0xff]  }
  0x41   :  { %1431 = vmatprep.subr.bf16.mxu1 %v1619_v7  ;;  %v1621_v10 = vld [vmem:[#allocation7 + $0x28] sm:$0xff]   ;;  %v1622_v12 = vld [vmem:[#allocation7 + $0x20] sm:$0xff]   ;;  %v1623_v13 = vld [vmem:[#allocation7 + $0x18] sm:$0xff]  }
  0x42   :  { %1432 = vmatpush3.bf16.msra.mxu1 %v1619_v7  ;;  %v1913_v14 = vld [vmem:[#allocation2 + $0x8] sm:$0xff]   ;;  %v1915_v15 = vld [vmem:[#allocation2 + $0x10] sm:$0xff]   ;;  %v1919_v17 = vld [vmem:[#allocation2 + $0x18] sm:$0xff]  }
  0x43   :  { %1402 = vmatpush3.bf16.msra.mxu0 %v1604_v1  ;;  %1433 = vmatprep.subr.bf16.mxu1 %v1620_v8  ;;  %v1624_v16 = vld [vmem:[#allocation7 + $0x10] sm:$0xff]   ;;  %v1921_v18 = vld [vmem:[#allocation2 + $0x20] sm:$0xff]   ;;  %v1925_v19 = vld [vmem:[#allocation2 + $0x28] sm:$0xff]  }
  0x44   :  { %1403 = vmatprep.subr.bf16.mxu0 %v1605_v2  ;;  %v1927_v20 = vld [vmem:[#allocation2 + $0x30] sm:$0xff]   ;;  %v1931_v21 = vld [vmem:[#allocation2 + $0x38] sm:$0xff]   ;;  %v1625_v22 = vld [vmem:[#allocation7 + $0x8] sm:$0xff]  }
  0x45   :  { %v1626_v23 = vld [vmem:[#allocation7] sm:$0xff]   ;;  %v1627_v48 = vld [vmem:[#allocation8 + $0x38] sm:$0xff]   ;;  %v1628_v49 = vld [vmem:[#allocation8 + $0x30] sm:$0xff]  }
  0x46   :  { %1434 = vmatpush3.bf16.msra.mxu1 %v1620_v8  ;;  %v1629_v50 = vld [vmem:[#allocation8 + $0x28] sm:$0xff]   ;;  %v1630_v51 = vld [vmem:[#allocation8 + $0x20] sm:$0xff]   ;;  %v1631_v52 = vld [vmem:[#allocation8 + $0x18] sm:$0xff]  }
  0x47   :  { %1404 = vmatpush3.bf16.msra.mxu0 %v1605_v2  ;;  %1435 = vmatprep.subr.bf16.mxu1 %v1621_v10  ;;  %v1632_v53 = vld [vmem:[#allocation8 + $0x10] sm:$0xff]   ;;  %v1938_v54 = vld [vmem:[%s2082_s3] ss:$0 sm:$0xff] }
  0x48   :  { %1405 = vmatprep.subr.bf16.mxu0 %v1606_v3 }
  0x4a   :  { %1436 = vmatpush3.bf16.msra.mxu1 %v1621_v10 }
  0x4b   :  { %1406 = vmatpush3.bf16.msra.mxu0 %v1606_v3  ;;  %1437 = vmatprep.subr.bf16.mxu1 %v1622_v12 }
  0x4c   :  { %1407 = vmatprep.subr.bf16.mxu0 %v1607_v5 }
  0x4e   :  { %1438 = vmatpush3.bf16.msra.mxu1 %v1622_v12 }
  0x4f   :  { %1408 = vmatpush3.bf16.msra.mxu0 %v1607_v5  ;;  %1439 = vmatprep.subr.bf16.mxu1 %v1623_v13 }
  0x50   :  { %1409 = vmatprep.subr.bf16.mxu0 %v1608_v6 }
  0x52   :  { %1440 = vmatpush3.bf16.msra.mxu1 %v1623_v13 }
  0x53   :  { %1410 = vmatpush3.bf16.msra.mxu0 %v1608_v6  ;;  %1441 = vmatprep.subr.bf16.mxu1 %v1624_v16 }
  0x54   :  { %1411 = vmatprep.subr.bf16.mxu0 %v1609_v9 }
  0x56   :  { %1442 = vmatpush3.bf16.msra.mxu1 %v1624_v16 }
  0x57   :  { %1412 = vmatpush3.bf16.msra.mxu0 %v1609_v9  ;;  %1443 = vmatprep.subr.bf16.mxu1 %v1625_v22 }
  0x58   :  { %1413 = vmatprep.subr.bf16.mxu0 %v1610_v11 }
  0x5a   :  { %1444 = vmatpush3.bf16.msra.mxu1 %v1625_v22 }
  0x5b   :  { %1414 = vmatpush3.bf16.msra.mxu0 %v1610_v11  ;;  %1445 = vmatprep.subr.bf16.mxu1 %v1626_v23 }
  0x5e   :  { %1416 = vmatmul.mubr.bf16.vlgmr.msra.gmra.mxu0 %v1913_v14  ;;  %1446 = vmatpush3.bf16.msra.mxu1 %v1626_v23 }
  0x5f   :  { %1419 = vmatprep.mubr.bf16.mxu0 %v1915_v15  ;;  %1495 = vmatprep.subr.bf16.mxu1 %v1627_v48 }
  0x66   :  { %1420 = vmatmul.mubr.bf16.gmra.mxu0 %v1919_v17 }
  0x67   :  { %1423 = vmatprep.mubr.bf16.mxu0 %v1921_v18 }
  0x6e   :  { %1424 = vmatmul.mubr.bf16.gmra.mxu0 %v1925_v19 }
  0x6f   :  { %1427 = vmatprep.mubr.bf16.mxu0 %v1927_v20 }
  0x76   :  { %1428 = vmatmul.mubr.bf16.gmra.mxu0 %v1931_v21 }
  0x77   :  { %1479 = vmatprep.mubr.bf16.mxu0 %v1910_v4 }
 0x11e   :  { %v1417_v24 = vpop.f32.mrf.mxu0 }
 0x120   :  { %v265_v25 = vpop.f32.mrf.mxu0 }
 0x122   :  { %v1418_v26 = vpop.f32.mrf.mxu0 }
 0x123   :  { %v329_v29 = vpack.c.bf16 %v1418_v26, %v1417_v24 }
 0x124   :  { %v268_v27 = vpop.f32.mrf.mxu0 }
 0x125   :  { %v328_v28 = vpack.c.bf16 %v268_v27, %v265_v25 }
 0x126   :  { %v1421_v30 = vpop.f32.mrf.mxu0 }
 0x127   :  { %1447 = vmatprep.mubr.bf16.mxu1 %v328_v28 }
 0x128   :  { %v281_v31 = vpop.f32.mrf.mxu0  ;;  %1448 = vmatmul.mubr.bf16.vlgmr.msra.gmra.mxu1 %v329_v29 }
 0x129   :  { %1496 = vmatpush3.bf16.msra.mxu1 %v1627_v48 }
 0x12a   :  { %v1422_v32 = vpop.f32.mrf.mxu0  ;;  %1497 = vmatprep.subr.bf16.mxu1 %v1628_v49 }
 0x12b   :  { %v331_v35 = vpack.c.bf16 %v1422_v32, %v1421_v30 }
 0x12c   :  { %v284_v33 = vpop.f32.mrf.mxu0 }
 0x12d   :  { %v330_v34 = vpack.c.bf16 %v284_v33, %v281_v31  ;;  %1498 = vmatpush3.bf16.msra.mxu1 %v1628_v49 }
 0x12e   :  { %v1425_v36 = vpop.f32.mrf.mxu0  ;;  %1499 = vmatprep.subr.bf16.mxu1 %v1629_v50 }
 0x12f   :  { %1451 = vmatprep.mubr.bf16.mxu1 %v330_v34 }
 0x130   :  { %v297_v37 = vpop.f32.mrf.mxu0  ;;  %1452 = vmatmul.mubr.bf16.gmra.mxu1 %v331_v35 }
 0x131   :  { %1500 = vmatpush3.bf16.msra.mxu1 %v1629_v50 }
 0x132   :  { %v1426_v38 = vpop.f32.mrf.mxu0  ;;  %1501 = vmatprep.subr.bf16.mxu1 %v1630_v51 }
 0x133   :  { %v333_v41 = vpack.c.bf16 %v1426_v38, %v1425_v36 }
 0x134   :  { %v300_v39 = vpop.f32.mrf.mxu0 }
 0x135   :  { %v332_v40 = vpack.c.bf16 %v300_v39, %v297_v37  ;;  %1502 = vmatpush3.bf16.msra.mxu1 %v1630_v51 }
 0x136   :  { %v1429_v42 = vpop.f32.mrf.mxu0  ;;  %1503 = vmatprep.subr.bf16.mxu1 %v1631_v52 }
 0x137   :  { %1455 = vmatprep.mubr.bf16.mxu1 %v332_v40 }
 0x138   :  { %v313_v43 = vpop.f32.mrf.mxu0  ;;  %1456 = vmatmul.mubr.bf16.gmra.mxu1 %v333_v41 }
 0x139   :  { %1504 = vmatpush3.bf16.msra.mxu1 %v1631_v52 }
 0x13a   :  { %v1430_v44 = vpop.f32.mrf.mxu0  ;;  %1505 = vmatprep.subr.bf16.mxu1 %v1632_v53 }
 0x13b   :  { %v335_v47 = vpack.c.bf16 %v1430_v44, %v1429_v42 }
 0x13c   :  { %v316_v45 = vpop.f32.mrf.mxu0 }
 0x13d   :  { %v334_v46 = vpack.c.bf16 %v316_v45, %v313_v43  ;;  %1506 = vmatpush3.bf16.msra.mxu1 %v1632_v53 }
 0x13f   :  { %1459 = vmatprep.mubr.bf16.mxu1 %v334_v46 }
 0x140   :  { %1460 = vmatmul.mubr.bf16.gmra.mxu1 %v335_v47 }
 0x1e8   :  { %v1449_v55 = vpop.f32.mrf.mxu1 }
 0x1e9   :  { %v450_v56 = vadd.f32 %v1449_v55, %v1938_v54 }
 0x1ea   :  { %v441_v57 = vpop.f32.mrf.mxu1 }
 0x1eb   :  { %v506_v58 = vmul.f32 0.2, %v450_v56  ;;  %v442_v59 = vadd.f32 %v1938_v54, %v441_v57 }
 0x1ec   :  { %v1450_v60 = vpop.f32.mrf.mxu1 }
 0x1ed   :  { %v1942_v61 = vmax.f32 %v450_v56, %v506_v58  ;;  %v504_v62 = vmul.f32 0.2, %v442_v59  ;;  %v453_v63 = vadd.f32 %v1450_v60, %v1938_v54 }
 0x1ee   :  { %v444_v0 = vpop.f32.mrf.mxu1 }
 0x1ef   :  { %538 = vst [vmem:[#allocation11 + $0x10] sm:$0xff] %v1942_v61  ;;  %v1946_v1 = vmax.f32 %v442_v59, %v504_v62  ;;  %v507_v2 = vmul.f32 0.2, %v453_v63  ;;  %v445_v3 = vadd.f32 %v1938_v54, %v444_v0 }
 0x1f0   :  { %v1453_v5 = vpop.f32.mrf.mxu1 }
 0x1f1   :  { %536 = vst [vmem:[#allocation11] sm:$0xff] %v1946_v1  ;;  %v1950_v6 = vmax.f32 %v453_v63, %v507_v2  ;;  %v505_v7 = vmul.f32 0.2, %v445_v3  ;;  %v466_v8 = vadd.f32 %v1453_v5, %v1938_v54 }
 0x1f2   :  { %v457_v9 = vpop.f32.mrf.mxu1 }
 0x1f3   :  { %539 = vst [vmem:[#allocation11 + $0x18] sm:$0xff] %v1950_v6  ;;  %v1954_v10 = vmax.f32 %v445_v3, %v505_v7  ;;  %v510_v11 = vmul.f32 0.2, %v466_v8  ;;  %v458_v12 = vadd.f32 %v1938_v54, %v457_v9  ;;  %v553_v9 = vpack.c.bf16 %v1950_v6, %v1942_v61  ;;  %v1633_v61 = vld [vmem:[#allocation8 + $0x8] sm:$0xff]  }
 0x1f4   :  { %v1454_v13 = vpop.f32.mrf.mxu1  ;;  %1507 = vmatprep.subr.bf16.mxu1 %v1633_v61 }
 0x1f5   :  { %537 = vst [vmem:[#allocation11 + $0x8] sm:$0xff] %v1954_v10  ;;  %v1958_v16 = vmax.f32 %v466_v8, %v510_v11  ;;  %v508_v22 = vmul.f32 0.2, %v458_v12  ;;  %v469_v23 = vadd.f32 %v1454_v13, %v1938_v54  ;;  %v552_v11 = vpack.c.bf16 %v1954_v10, %v1946_v1  ;;  %1508 = vmatpush3.bf16.msra.mxu1 %v1633_v61  ;;  %v1634_v1 = vld [vmem:[#allocation8] sm:$0xff]  }
 0x1f6   :  { %v460_v24 = vpop.f32.mrf.mxu1  ;;  %1509 = vmatprep.subr.bf16.mxu1 %v1634_v1 }
 0x1f7   :  { %542 = vst [vmem:[#allocation11 + $0x30] sm:$0xff] %v1958_v16  ;;  %v1962_v25 = vmax.f32 %v458_v12, %v508_v22  ;;  %v511_v26 = vmul.f32 0.2, %v469_v23  ;;  %v461_v27 = vadd.f32 %v1938_v54, %v460_v24 }
 0x1f8   :  { %v1457_v28 = vpop.f32.mrf.mxu1 }
 0x1f9   :  { %540 = vst [vmem:[#allocation11 + $0x20] sm:$0xff] %v1962_v25  ;;  %v527_v29 = vmax.f32 %v469_v23, %v511_v26  ;;  %v509_v30 = vmul.f32 0.2, %v461_v27  ;;  %v482_v31 = vadd.f32 %v1457_v28, %v1938_v54  ;;  %1510 = vmatpush3.bf16.msra.mxu1 %v1634_v1 }
 0x1fa   :  { %v473_v32 = vpop.f32.mrf.mxu1 }
 0x1fb   :  { %543 = vst [vmem:[#allocation11 + $0x38] sm:$0xff] %v527_v29  ;;  %v525_v33 = vmax.f32 %v461_v27, %v509_v30  ;;  %v514_v34 = vmul.f32 0.2, %v482_v31  ;;  %v474_v35 = vadd.f32 %v1938_v54, %v473_v32  ;;  %v555_v8 = vpack.c.bf16 %v527_v29, %v1958_v16 }
 0x1fc   :  { %v1458_v36 = vpop.f32.mrf.mxu1 }
 0x1fd   :  { %541 = vst [vmem:[#allocation11 + $0x28] sm:$0xff] %v525_v33  ;;  %v530_v37 = vmax.f32 %v482_v31, %v514_v34  ;;  %v512_v38 = vmul.f32 0.2, %v474_v35  ;;  %v485_v39 = vadd.f32 %v1458_v36, %v1938_v54 }
 0x1fe   :  { %v476_v40 = vpop.f32.mrf.mxu1 }
 0x1ff   :  { %546 = vst [vmem:[#allocation11 + $0x50] sm:$0xff] %v530_v37  ;;  %v528_v41 = vmax.f32 %v474_v35, %v512_v38  ;;  %v515_v42 = vmul.f32 0.2, %v485_v39  ;;  %v477_v43 = vadd.f32 %v1938_v54, %v476_v40  ;;  %v1635_v40 = vld [vmem:[#allocation10 + $0x38] sm:$0xff]  }
 0x200   :  { %v1461_v44 = vpop.f32.mrf.mxu1  ;;  %1559 = vmatprep.subr.bf16.mxu1 %v1635_v40 }
 0x201   :  { %544 = vst [vmem:[#allocation11 + $0x40] sm:$0xff] %v528_v41  ;;  %v531_v45 = vmax.f32 %v485_v39, %v515_v42  ;;  %v513_v46 = vmul.f32 0.2, %v477_v43  ;;  %v498_v47 = vadd.f32 %v1461_v44, %v1938_v54  ;;  %v1637_v42 = vld [vmem:[#allocation10 + $0x28] sm:$0xff]   ;;  %v1639_v44 = vld [vmem:[#allocation10 + $0x18] sm:$0xff]  }
 0x202   :  { %v489_v48 = vpop.f32.mrf.mxu1 }
 0x203   :  { %547 = vst [vmem:[#allocation11 + $0x58] sm:$0xff] %v531_v45  ;;  %v529_v49 = vmax.f32 %v477_v43, %v513_v46  ;;  %v518_v50 = vmul.f32 0.2, %v498_v47  ;;  %v490_v51 = vadd.f32 %v1938_v54, %v489_v48  ;;  %v557_v5 = vpack.c.bf16 %v531_v45, %v530_v37  ;;  %v1638_v43 = vld [vmem:[#allocation10 + $0x20] sm:$0xff]   ;;  %v1640_v45 = vld [vmem:[#allocation10 + $0x10] sm:$0xff]  }
 0x204   :  { %v1462_v52 = vpop.f32.mrf.mxu1  ;;  %v1991_v46 = vld [vmem:[%s2084_s5] ss:$0 sm:$0xff]  ;;  %s1820_s5 = smov [#allocation12]  }
 0x205   :  { %545 = vst [vmem:[#allocation11 + $0x48] sm:$0xff] %v529_v49  ;;  %v534_v53 = vmax.f32 %v498_v47, %v518_v50  ;;  %v516_v55 = vmul.f32 0.2, %v490_v51  ;;  %v501_v56 = vadd.f32 %v1462_v52, %v1938_v54  ;;  %v556_v7 = vpack.c.bf16 %v529_v49, %v528_v41  ;;  %v1636_v41 = vld [vmem:[#allocation10 + $0x30] sm:$0xff]   ;;  %s1227_s18 = sshll.u32 %s1820_s5, 4  ;;  %s1228_s18 = int_to_ptr.vmem [resolvable:$true] %s1227_s18 }
 0x206   :  { %v492_v57 = vpop.f32.mrf.mxu1  ;;  %s1743_s21 = scalar_lea.vmem %s1228_s18, 2048  ;;  %p1748_p12 = scmp.lt.s32.totalorder %s1228_s18, %s1228_s18 }
 0x207   :  { %550 = vst [vmem:[#allocation11 + $0x70] sm:$0xff] %v534_v53  ;;  %v532_v58 = vmax.f32 %v490_v51, %v516_v55  ;;  %v519_v59 = vmul.f32 0.2, %v501_v56  ;;  %v493_v60 = vadd.f32 %v1938_v54, %v492_v57  ;;  %v554_v54 = vpack.c.bf16 %v525_v33, %v1962_v25  ;;  %p1744_p11 = scmp.ne.s32.totalorder %s1228_s18, %s1743_s21  ;;  %p1749_p13 = scmp.lt.s32.totalorder %s1743_s21, %s1743_s21 }
 0x209   :  { %548 = vst [vmem:[#allocation11 + $0x60] sm:$0xff] %v532_v58  ;;  %v535_v62 = vmax.f32 %v501_v56, %v519_v59  ;;  %v517_v63 = vmul.f32 0.2, %v493_v60  ;;  %p1750_p0 = por %p1749_p13, %p1748_p12 }
 0x20b   :  { %551 = vst [vmem:[#allocation11 + $0x78] sm:$0xff] %v535_v62  ;;  %v533_v0 = vmax.f32 %v493_v60, %v517_v63  ;;  %v559_v2 = vpack.c.bf16 %v535_v62, %v534_v53  ;;  %p1751_p1 = pnand %p1750_p0, %p1744_p11 }
 0x20d   :  { %549 = vst [vmem:[#allocation11 + $0x68] sm:$0xff] %v533_v0  ;;  %1463 = vmatprep.subr.bf16.mxu0 %v559_v2  ;;  %v558_v3 = vpack.c.bf16 %v533_v0, %v532_v58 }
 0x20e   :  { %1464 = vmatpush3.bf16.msra.mxu0 %v559_v2 }
 0x20f   :  { %1465 = vmatprep.subr.bf16.mxu0 %v558_v3 }
 0x212   :  { %1466 = vmatpush3.bf16.msra.mxu0 %v558_v3 }
 0x213   :  { %1467 = vmatprep.subr.bf16.mxu0 %v557_v5 }
 0x216   :  { %1468 = vmatpush3.bf16.msra.mxu0 %v557_v5 }
 0x217   :  { %1469 = vmatprep.subr.bf16.mxu0 %v556_v7 }
 0x21a   :  { %1470 = vmatpush3.bf16.msra.mxu0 %v556_v7 }
 0x21b   :  { %1471 = vmatprep.subr.bf16.mxu0 %v555_v8 }
 0x21e   :  { %1472 = vmatpush3.bf16.msra.mxu0 %v555_v8 }
 0x21f   :  { %1473 = vmatprep.subr.bf16.mxu0 %v554_v54 }
 0x222   :  { %1474 = vmatpush3.bf16.msra.mxu0 %v554_v54 }
 0x223   :  { %1475 = vmatprep.subr.bf16.mxu0 %v553_v9 }
 0x226   :  { %1476 = vmatpush3.bf16.msra.mxu0 %v553_v9 }
 0x227   :  { %1477 = vmatprep.subr.bf16.mxu0 %v552_v11 }
 0x22a   :  { %1478 = vmatpush3.bf16.msra.mxu0 %v552_v11 }
 0x22d   :  { %1480 = vmatmul.mubr.bf16.vlgmr.msra.gmra.mxu0 %v1913_v14 }
 0x22e   :  { %1483 = vmatprep.mubr.bf16.mxu0 %v1915_v15 }
 0x235   :  { %1484 = vmatmul.mubr.bf16.gmra.mxu0 %v1919_v17 }
 0x236   :  { %1487 = vmatprep.mubr.bf16.mxu0 %v1921_v18 }
 0x23d   :  { %1488 = vmatmul.mubr.bf16.gmra.mxu0 %v1925_v19 }
 0x23e   :  { %1491 = vmatprep.mubr.bf16.mxu0 %v1927_v20 }
 0x245   :  { %1492 = vmatmul.mubr.bf16.gmra.mxu0 %v1931_v21 }
 0x246   :  { %1543 = vmatprep.mubr.bf16.mxu0 %v1910_v4 }
 0x2ed   :  { %v1481_v6 = vpop.f32.mrf.mxu0 }
 0x2ef   :  { %v594_v10 = vpop.f32.mrf.mxu0 }
 0x2f1   :  { %v1482_v12 = vpop.f32.mrf.mxu0 }
 0x2f2   :  { %v658_v22 = vpack.c.bf16 %v1482_v12, %v1481_v6 }
 0x2f3   :  { %v597_v13 = vpop.f32.mrf.mxu0 }
 0x2f4   :  { %v657_v16 = vpack.c.bf16 %v597_v13, %v594_v10 }
 0x2f5   :  { %v1485_v23 = vpop.f32.mrf.mxu0 }
 0x2f6   :  { %1511 = vmatprep.mubr.bf16.mxu1 %v657_v16 }
 0x2f7   :  { %v610_v24 = vpop.f32.mrf.mxu0  ;;  %1512 = vmatmul.mubr.bf16.vlgmr.msra.gmra.mxu1 %v658_v22 }
 0x2f8   :  { %1560 = vmatpush3.bf16.msra.mxu1 %v1635_v40 }
 0x2f9   :  { %v1486_v25 = vpop.f32.mrf.mxu0  ;;  %1561 = vmatprep.subr.bf16.mxu1 %v1636_v41 }
 0x2fa   :  { %v660_v4 = vpack.c.bf16 %v1486_v25, %v1485_v23 }
 0x2fb   :  { %v613_v26 = vpop.f32.mrf.mxu0 }
 0x2fc   :  { %v659_v27 = vpack.c.bf16 %v613_v26, %v610_v24  ;;  %1562 = vmatpush3.bf16.msra.mxu1 %v1636_v41 }
 0x2fd   :  { %v1489_v28 = vpop.f32.mrf.mxu0  ;;  %1563 = vmatprep.subr.bf16.mxu1 %v1637_v42 }
 0x2fe   :  { %1515 = vmatprep.mubr.bf16.mxu1 %v659_v27 }
 0x2ff   :  { %v626_v29 = vpop.f32.mrf.mxu0  ;;  %1516 = vmatmul.mubr.bf16.gmra.mxu1 %v660_v4 }
 0x300   :  { %1564 = vmatpush3.bf16.msra.mxu1 %v1637_v42 }
 0x301   :  { %v1490_v30 = vpop.f32.mrf.mxu0  ;;  %1565 = vmatprep.subr.bf16.mxu1 %v1638_v43 }
 0x302   :  { %v662_v33 = vpack.c.bf16 %v1490_v30, %v1489_v28 }
 0x303   :  { %v629_v31 = vpop.f32.mrf.mxu0 }
 0x304   :  { %v661_v32 = vpack.c.bf16 %v629_v31, %v626_v29  ;;  %1566 = vmatpush3.bf16.msra.mxu1 %v1638_v43 }
 0x305   :  { %v1493_v34 = vpop.f32.mrf.mxu0  ;;  %1567 = vmatprep.subr.bf16.mxu1 %v1639_v44 }
 0x306   :  { %1519 = vmatprep.mubr.bf16.mxu1 %v661_v32 }
 0x307   :  { %v642_v35 = vpop.f32.mrf.mxu0  ;;  %1520 = vmatmul.mubr.bf16.gmra.mxu1 %v662_v33 }
 0x308   :  { %1568 = vmatpush3.bf16.msra.mxu1 %v1639_v44 }
 0x309   :  { %v1494_v36 = vpop.f32.mrf.mxu0  ;;  %1569 = vmatprep.subr.bf16.mxu1 %v1640_v45 }
 0x30a   :  { %v664_v39 = vpack.c.bf16 %v1494_v36, %v1493_v34 }
 0x30b   :  { %v645_v37 = vpop.f32.mrf.mxu0 }
 0x30c   :  { %v663_v38 = vpack.c.bf16 %v645_v37, %v642_v35  ;;  %1570 = vmatpush3.bf16.msra.mxu1 %v1640_v45 }
 0x30e   :  { %1523 = vmatprep.mubr.bf16.mxu1 %v663_v38 }
 0x30f   :  { %1524 = vmatmul.mubr.bf16.gmra.mxu1 %v664_v39 }
 0x3b7   :  { %v1513_v47 = vpop.f32.mrf.mxu1 }
 0x3b8   :  { %v779_v48 = vadd.f32 %v1513_v47, %v1991_v46 }
 0x3b9   :  { %v770_v49 = vpop.f32.mrf.mxu1 }
 0x3ba   :  { %v835_v50 = vmul.f32 0.2, %v779_v48  ;;  %v771_v51 = vadd.f32 %v1991_v46, %v770_v49 }
 0x3bb   :  { %v1514_v52 = vpop.f32.mrf.mxu1 }
 0x3bc   :  { %v1995_v53 = vmax.f32 %v779_v48, %v835_v50  ;;  %v833_v55 = vmul.f32 0.2, %v771_v51  ;;  %v782_v56 = vadd.f32 %v1514_v52, %v1991_v46 }
 0x3bd   :  { %v773_v57 = vpop.f32.mrf.mxu1 }
 0x3be   :  { %867 = vst [vmem:[#allocation12 + $0x10] sm:$0xff] %v1995_v53  ;;  %v1999_v58 = vmax.f32 %v771_v51, %v833_v55  ;;  %v836_v59 = vmul.f32 0.2, %v782_v56  ;;  %v774_v60 = vadd.f32 %v1991_v46, %v773_v57 }
 0x3bf   :  { %v1517_v62 = vpop.f32.mrf.mxu1 }
 0x3c0   :  { %865 = vst [vmem:[#allocation12] sm:$0xff] %v1999_v58  ;;  %v2003_v63 = vmax.f32 %v782_v56, %v836_v59  ;;  %v834_v0 = vmul.f32 0.2, %v774_v60  ;;  %v795_v2 = vadd.f32 %v1517_v62, %v1991_v46 }
 0x3c1   :  { %v786_v3 = vpop.f32.mrf.mxu1 }
 0x3c2   :  { %868 = vst [vmem:[#allocation12 + $0x18] sm:$0xff] %v2003_v63  ;;  %v2007_v5 = vmax.f32 %v774_v60, %v834_v0  ;;  %v839_v7 = vmul.f32 0.2, %v795_v2  ;;  %v787_v8 = vadd.f32 %v1991_v46, %v786_v3 }
 0x3c3   :  { %v1518_v54 = vpop.f32.mrf.mxu1 }
 0x3c4   :  { %866 = vst [vmem:[#allocation12 + $0x8] sm:$0xff] %v2007_v5  ;;  %v2011_v9 = vmax.f32 %v795_v2, %v839_v7  ;;  %v837_v11 = vmul.f32 0.2, %v787_v8  ;;  %v798_v61 = vadd.f32 %v1518_v54, %v1991_v46  ;;  %v882_v2 = vpack.c.bf16 %v2003_v63, %v1995_v53  ;;  %v1641_v53 = vld [vmem:[#allocation10 + $0x8] sm:$0xff]  }
 0x3c5   :  { %v789_v1 = vpop.f32.mrf.mxu1  ;;  %v881_v3 = vpack.c.bf16 %v2007_v5, %v1999_v58  ;;  %1571 = vmatprep.subr.bf16.mxu1 %v1641_v53  ;;  %v1642_v58 = vld [vmem:[#allocation10] sm:$0xff]  }
 0x3c6   :  { %871 = vst [vmem:[#allocation12 + $0x30] sm:$0xff] %v2011_v9  ;;  %v2015_v6 = vmax.f32 %v787_v8, %v837_v11  ;;  %v840_v10 = vmul.f32 0.2, %v798_v61  ;;  %v790_v12 = vadd.f32 %v1991_v46, %v789_v1  ;;  %1572 = vmatpush3.bf16.msra.mxu1 %v1641_v53 }
 0x3c7   :  { %v1521_v13 = vpop.f32.mrf.mxu1  ;;  %1573 = vmatprep.subr.bf16.mxu1 %v1642_v58 }
 0x3c8   :  { %869 = vst [vmem:[#allocation12 + $0x20] sm:$0xff] %v2015_v6  ;;  %v856_v16 = vmax.f32 %v798_v61, %v840_v10  ;;  %v838_v22 = vmul.f32 0.2, %v790_v12  ;;  %v811_v23 = vadd.f32 %v1521_v13, %v1991_v46 }
 0x3c9   :  { %v802_v24 = vpop.f32.mrf.mxu1 }
 0x3ca   :  { %872 = vst [vmem:[#allocation12 + $0x38] sm:$0xff] %v856_v16  ;;  %v854_v25 = vmax.f32 %v790_v12, %v838_v22  ;;  %v843_v26 = vmul.f32 0.2, %v811_v23  ;;  %v803_v27 = vadd.f32 %v1991_v46, %v802_v24  ;;  %v884_v0 = vpack.c.bf16 %v856_v16, %v2011_v9  ;;  %1574 = vmatpush3.bf16.msra.mxu1 %v1642_v58 }
 0x3cb   :  { %v1522_v4 = vpop.f32.mrf.mxu1 }
 0x3cc   :  { %870 = vst [vmem:[#allocation12 + $0x28] sm:$0xff] %v854_v25  ;;  %v859_v28 = vmax.f32 %v811_v23, %v843_v26  ;;  %v841_v29 = vmul.f32 0.2, %v803_v27  ;;  %v814_v30 = vadd.f32 %v1522_v4, %v1991_v46 }
 0x3cd   :  { %v805_v31 = vpop.f32.mrf.mxu1 }
 0x3ce   :  { %875 = vst [vmem:[#allocation12 + $0x50] sm:$0xff] %v859_v28  ;;  %v857_v32 = vmax.f32 %v803_v27, %v841_v29  ;;  %v844_v33 = vmul.f32 0.2, %v814_v30  ;;  %v806_v34 = vadd.f32 %v1991_v46, %v805_v31 }
 0x3cf   :  { %v1525_v35 = vpop.f32.mrf.mxu1 }
 0x3d0   :  { %873 = vst [vmem:[#allocation12 + $0x40] sm:$0xff] %v857_v32  ;;  %v860_v36 = vmax.f32 %v814_v30, %v844_v33  ;;  %v842_v37 = vmul.f32 0.2, %v806_v34  ;;  %v827_v38 = vadd.f32 %v1525_v35, %v1991_v46 }
 0x3d1   :  { %v818_v39 = vpop.f32.mrf.mxu1 }
 0x3d2   :  { %876 = vst [vmem:[#allocation12 + $0x58] sm:$0xff] %v860_v36  ;;  %v858_v40 = vmax.f32 %v806_v34, %v842_v37  ;;  %v847_v41 = vmul.f32 0.2, %v827_v38  ;;  %v819_v42 = vadd.f32 %v1991_v46, %v818_v39  ;;  %v886_v60 = vpack.c.bf16 %v860_v36, %v859_v28 }
 0x3d3   :  { %v1526_v43 = vpop.f32.mrf.mxu1 }
 0x3d4   :  { %874 = vst [vmem:[#allocation12 + $0x48] sm:$0xff] %v858_v40  ;;  %v863_v44 = vmax.f32 %v827_v38, %v847_v41  ;;  %v845_v45 = vmul.f32 0.2, %v819_v42  ;;  %v830_v47 = vadd.f32 %v1526_v43, %v1991_v46  ;;  %v885_v62 = vpack.c.bf16 %v858_v40, %v857_v32 }
 0x3d5   :  { %v821_v48 = vpop.f32.mrf.mxu1 }
 0x3d6   :  { %879 = vst [vmem:[#allocation12 + $0x70] sm:$0xff] %v863_v44  ;;  %v861_v49 = vmax.f32 %v819_v42, %v845_v45  ;;  %v848_v50 = vmul.f32 0.2, %v830_v47  ;;  %v822_v51 = vadd.f32 %v1991_v46, %v821_v48  ;;  %v883_v46 = vpack.c.bf16 %v854_v25, %v2015_v6 }
 0x3d8   :  { %877 = vst [vmem:[#allocation12 + $0x60] sm:$0xff] %v861_v49  ;;  %v864_v52 = vmax.f32 %v830_v47, %v848_v50  ;;  %v846_v55 = vmul.f32 0.2, %v822_v51 }
 0x3da   :  { %880 = vst [vmem:[#allocation12 + $0x78] sm:$0xff] %v864_v52  ;;  %v862_v56 = vmax.f32 %v822_v51, %v846_v55  ;;  %v888_v57 = vpack.c.bf16 %v864_v52, %v863_v44 }
 0x3dc   :  { %878 = vst [vmem:[#allocation12 + $0x68] sm:$0xff] %v862_v56  ;;  %1527 = vmatprep.subr.bf16.mxu0 %v888_v57  ;;  %v887_v59 = vpack.c.bf16 %v862_v56, %v861_v49 }
 0x3dd   :  { %1528 = vmatpush3.bf16.msra.mxu0 %v888_v57 }
 0x3de   :  { %1529 = vmatprep.subr.bf16.mxu0 %v887_v59 }
 0x3e1   :  { %1530 = vmatpush3.bf16.msra.mxu0 %v887_v59 }
 0x3e2   :  { %1531 = vmatprep.subr.bf16.mxu0 %v886_v60 }
 0x3e5   :  { %1532 = vmatpush3.bf16.msra.mxu0 %v886_v60 }
 0x3e6   :  { %1533 = vmatprep.subr.bf16.mxu0 %v885_v62 }
 0x3e9   :  { %1534 = vmatpush3.bf16.msra.mxu0 %v885_v62 }
 0x3ea   :  { %1535 = vmatprep.subr.bf16.mxu0 %v884_v0 }
 0x3ed   :  { %1536 = vmatpush3.bf16.msra.mxu0 %v884_v0 }
 0x3ee   :  { %1537 = vmatprep.subr.bf16.mxu0 %v883_v46 }
 0x3f1   :  { %1538 = vmatpush3.bf16.msra.mxu0 %v883_v46 }
 0x3f2   :  { %1539 = vmatprep.subr.bf16.mxu0 %v882_v2 }
 0x3f5   :  { %1540 = vmatpush3.bf16.msra.mxu0 %v882_v2 }
 0x3f6   :  { %1541 = vmatprep.subr.bf16.mxu0 %v881_v3 }
 0x3f9   :  { %1542 = vmatpush3.bf16.msra.mxu0 %v881_v3 }
 0x3fc   :  { %1544 = vmatmul.mubr.bf16.vlgmr.msra.gmra.mxu0 %v1913_v14 }
 0x3fd   :  { %1547 = vmatprep.mubr.bf16.mxu0 %v1915_v15 }
 0x404   :  { %1548 = vmatmul.mubr.bf16.gmra.mxu0 %v1919_v17 }
 0x405   :  { %1551 = vmatprep.mubr.bf16.mxu0 %v1921_v18 }
 0x40c   :  { %1552 = vmatmul.mubr.bf16.gmra.mxu0 %v1925_v19 }
 0x40d   :  { %1555 = vmatprep.mubr.bf16.mxu0 %v1927_v20 }
 0x414   :  { %1556 = vmatmul.mubr.bf16.gmra.mxu0 %v1931_v21 }
 0x4bc   :  { %v1545_v63 = vpop.f32.mrf.mxu0 }
 0x4be   :  { %v923_v14 = vpop.f32.mrf.mxu0 }
 0x4c0   :  { %v1546_v5 = vpop.f32.mrf.mxu0 }
 0x4c1   :  { %v987_v17 = vpack.c.bf16 %v1546_v5, %v1545_v63 }
 0x4c2   :  { %v926_v15 = vpop.f32.mrf.mxu0 }
 0x4c3   :  { %v986_v7 = vpack.c.bf16 %v926_v15, %v923_v14 }
 0x4c4   :  { %v1549_v8 = vpop.f32.mrf.mxu0 }
 0x4c5   :  { %1575 = vmatprep.mubr.bf16.mxu1 %v986_v7 }
 0x4c6   :  { %v939_v18 = vpop.f32.mrf.mxu0  ;;  %1576 = vmatmul.mubr.bf16.vlgmr.msra.gmra.mxu1 %v987_v17 }
 0x4c8   :  { %v1550_v19 = vpop.f32.mrf.mxu0 }
 0x4c9   :  { %v989_v21 = vpack.c.bf16 %v1550_v19, %v1549_v8 }
 0x4ca   :  { %v942_v20 = vpop.f32.mrf.mxu0 }
 0x4cb   :  { %v988_v54 = vpack.c.bf16 %v942_v20, %v939_v18 }
 0x4cc   :  { %v1553_v9 = vpop.f32.mrf.mxu0 }
 0x4cd   :  { %1579 = vmatprep.mubr.bf16.mxu1 %v988_v54 }
 0x4ce   :  { %v955_v11 = vpop.f32.mrf.mxu0  ;;  %1580 = vmatmul.mubr.bf16.gmra.mxu1 %v989_v21 }
 0x4d0   :  { %v1554_v61 = vpop.f32.mrf.mxu0 }
 0x4d1   :  { %v991_v10 = vpack.c.bf16 %v1554_v61, %v1553_v9 }
 0x4d2   :  { %v958_v1 = vpop.f32.mrf.mxu0 }
 0x4d3   :  { %v990_v6 = vpack.c.bf16 %v958_v1, %v955_v11 }
 0x4d4   :  { %v1557_v12 = vpop.f32.mrf.mxu0 }
 0x4d5   :  { %1583 = vmatprep.mubr.bf16.mxu1 %v990_v6 }
 0x4d6   :  { %v971_v13 = vpop.f32.mrf.mxu0  ;;  %1584 = vmatmul.mubr.bf16.gmra.mxu1 %v991_v10 }
 0x4d8   :  { %v1558_v16 = vpop.f32.mrf.mxu0 }
 0x4d9   :  { %v993_v24 = vpack.c.bf16 %v1558_v16, %v1557_v12 }
 0x4da   :  { %v974_v22 = vpop.f32.mrf.mxu0 }
 0x4db   :  { %v992_v23 = vpack.c.bf16 %v974_v22, %v971_v13 }
 0x4dd   :  { %1587 = vmatprep.mubr.bf16.mxu1 %v992_v23 }
 0x4de   :  { %1588 = vmatmul.mubr.bf16.gmra.mxu1 %v993_v24 }
 0x4df   :  { %1754 = shalt.err (!%p1751_p1)
}
 0x4e0   :  { %s1822_s22 = smov 128   ;;  %s1823_s23 = smov 8  }
 0x4e1   :  { %1233 = dma.vmem_to_hbm [thread:$0]  %s1228_s18, 2048, %s2088_s9, [#allocation13], %s1822_s22, %s1822_s22, %s1823_s23  }
 0x4e2   :  { %s1763_s26 = scalar_lea.vmem %s1216_s20, 2048  ;;  %p1768_p3 = scmp.lt.s32.totalorder %s1216_s20, %s1216_s20 }
 0x4e3   :  { %p1764_p2 = scmp.ne.s32.totalorder %s1216_s20, %s1763_s26  ;;  %p1769_p4 = scmp.lt.s32.totalorder %s1763_s26, %s1763_s26 }
 0x4e5   :  { %p1770_p5 = por %p1769_p4, %p1768_p3 }
 0x4e7   :  { %p1771_p6 = pnand %p1770_p5, %p1764_p2 }
 0x4e9   :  { %1774 = shalt.err (!%p1771_p6)
}
 0x4ea   :  { %1221 = dma.vmem_to_hbm [thread:$0]  %s1216_s20, 2048, %s2087_s8, [#allocation4], %s1822_s22, %s1822_s22, %s1823_s23  }
 0x4eb   :  { %v2055_v25 = vld [vmem:[%s2086_s7] ss:$0 sm:$0xff]  ;;  %s1824_s7 = smov [#allocation14]  }
 0x4ec   :  { %s1239_s8 = sshll.u32 %s1824_s7, 4  ;;  %s1240_s8 = int_to_ptr.vmem [resolvable:$true] %s1239_s8 }
 0x4ed   :  { %s1783_s9 = scalar_lea.vmem %s1240_s8, 2048  ;;  %p1788_p8 = scmp.lt.s32.totalorder %s1240_s8, %s1240_s8 }
 0x4ee   :  { %p1784_p7 = scmp.ne.s32.totalorder %s1240_s8, %s1783_s9  ;;  %p1789_p9 = scmp.lt.s32.totalorder %s1783_s9, %s1783_s9 }
 0x4f0   :  { %p1790_p10 = por %p1789_p9, %p1788_p8 }
 0x4f2   :  { %p1791_p11 = pnand %p1790_p10, %p1784_p7 }
 0x586   :  { %v1577_v26 = vpop.f32.mrf.mxu1 }
 0x587   :  { %v1108_v27 = vadd.f32 %v1577_v26, %v2055_v25 }
 0x588   :  { %v1099_v4 = vpop.f32.mrf.mxu1 }
 0x589   :  { %v1164_v28 = vmul.f32 0.2, %v1108_v27  ;;  %v1100_v29 = vadd.f32 %v2055_v25, %v1099_v4 }
 0x58a   :  { %v1578_v30 = vpop.f32.mrf.mxu1 }
 0x58b   :  { %v1180_v31 = vmax.f32 %v1108_v27, %v1164_v28  ;;  %v1162_v32 = vmul.f32 0.2, %v1100_v29  ;;  %v1111_v33 = vadd.f32 %v1578_v30, %v2055_v25 }
 0x58c   :  { %v1102_v34 = vpop.f32.mrf.mxu1 }
 0x58d   :  { %1196 = vst [vmem:[#allocation14 + $0x10] sm:$0xff] %v1180_v31  ;;  %v1178_v35 = vmax.f32 %v1100_v29, %v1162_v32  ;;  %v1165_v36 = vmul.f32 0.2, %v1111_v33  ;;  %v1103_v37 = vadd.f32 %v2055_v25, %v1102_v34 }
 0x58e   :  { %v1581_v38 = vpop.f32.mrf.mxu1 }
 0x58f   :  { %1194 = vst [vmem:[#allocation14] sm:$0xff] %v1178_v35  ;;  %v1181_v39 = vmax.f32 %v1111_v33, %v1165_v36  ;;  %v1163_v40 = vmul.f32 0.2, %v1103_v37  ;;  %v1124_v41 = vadd.f32 %v1581_v38, %v2055_v25 }
 0x590   :  { %v1115_v42 = vpop.f32.mrf.mxu1 }
 0x591   :  { %1197 = vst [vmem:[#allocation14 + $0x18] sm:$0xff] %v1181_v39  ;;  %v1179_v43 = vmax.f32 %v1103_v37, %v1163_v40  ;;  %v1168_v44 = vmul.f32 0.2, %v1124_v41  ;;  %v1116_v45 = vadd.f32 %v2055_v25, %v1115_v42 }
 0x592   :  { %v1582_v47 = vpop.f32.mrf.mxu1 }
 0x593   :  { %1195 = vst [vmem:[#allocation14 + $0x8] sm:$0xff] %v1179_v43  ;;  %v1184_v48 = vmax.f32 %v1124_v41, %v1168_v44  ;;  %v1166_v49 = vmul.f32 0.2, %v1116_v45  ;;  %v1127_v50 = vadd.f32 %v1582_v47, %v2055_v25 }
 0x594   :  { %v1118_v51 = vpop.f32.mrf.mxu1 }
 0x595   :  { %1200 = vst [vmem:[#allocation14 + $0x30] sm:$0xff] %v1184_v48  ;;  %v1182_v52 = vmax.f32 %v1116_v45, %v1166_v49  ;;  %v1169_v55 = vmul.f32 0.2, %v1127_v50  ;;  %v1119_v56 = vadd.f32 %v2055_v25, %v1118_v51 }
 0x596   :  { %v1585_v57 = vpop.f32.mrf.mxu1 }
 0x597   :  { %1198 = vst [vmem:[#allocation14 + $0x20] sm:$0xff] %v1182_v52  ;;  %v1185_v59 = vmax.f32 %v1127_v50, %v1169_v55  ;;  %v1167_v60 = vmul.f32 0.2, %v1119_v56  ;;  %v1140_v62 = vadd.f32 %v1585_v57, %v2055_v25 }
 0x598   :  { %v1131_v0 = vpop.f32.mrf.mxu1 }
 0x599   :  { %1201 = vst [vmem:[#allocation14 + $0x38] sm:$0xff] %v1185_v59  ;;  %v1183_v46 = vmax.f32 %v1119_v56, %v1167_v60  ;;  %v1172_v2 = vmul.f32 0.2, %v1140_v62  ;;  %v1132_v3 = vadd.f32 %v2055_v25, %v1131_v0 }
 0x59a   :  { %v1586_v53 = vpop.f32.mrf.mxu1 }
 0x59b   :  { %1199 = vst [vmem:[#allocation14 + $0x28] sm:$0xff] %v1183_v46  ;;  %v1188_v58 = vmax.f32 %v1140_v62, %v1172_v2  ;;  %v1170_v63 = vmul.f32 0.2, %v1132_v3  ;;  %v1143_v14 = vadd.f32 %v1586_v53, %v2055_v25 }
 0x59c   :  { %v1134_v5 = vpop.f32.mrf.mxu1 }
 0x59d   :  { %1204 = vst [vmem:[#allocation14 + $0x50] sm:$0xff] %v1188_v58  ;;  %v1186_v15 = vmax.f32 %v1132_v3, %v1170_v63  ;;  %v1173_v7 = vmul.f32 0.2, %v1143_v14  ;;  %v1135_v17 = vadd.f32 %v2055_v25, %v1134_v5 }
 0x59e   :  { %v1589_v8 = vpop.f32.mrf.mxu1 }
 0x59f   :  { %1202 = vst [vmem:[#allocation14 + $0x40] sm:$0xff] %v1186_v15  ;;  %v1189_v18 = vmax.f32 %v1143_v14, %v1173_v7  ;;  %v1171_v19 = vmul.f32 0.2, %v1135_v17  ;;  %v1156_v20 = vadd.f32 %v1589_v8, %v2055_v25 }
 0x5a0   :  { %v1147_v54 = vpop.f32.mrf.mxu1 }
 0x5a1   :  { %1205 = vst [vmem:[#allocation14 + $0x58] sm:$0xff] %v1189_v18  ;;  %v1187_v21 = vmax.f32 %v1135_v17, %v1171_v19  ;;  %v1176_v9 = vmul.f32 0.2, %v1156_v20  ;;  %v1148_v11 = vadd.f32 %v2055_v25, %v1147_v54 }
 0x5a2   :  { %v1590_v61 = vpop.f32.mrf.mxu1 }
 0x5a3   :  { %1203 = vst [vmem:[#allocation14 + $0x48] sm:$0xff] %v1187_v21  ;;  %v1192_v1 = vmax.f32 %v1156_v20, %v1176_v9  ;;  %v1174_v6 = vmul.f32 0.2, %v1148_v11  ;;  %v1159_v10 = vadd.f32 %v1590_v61, %v2055_v25 }
 0x5a4   :  { %v1150_v12 = vpop.f32.mrf.mxu1 }
 0x5a5   :  { %1208 = vst [vmem:[#allocation14 + $0x70] sm:$0xff] %v1192_v1  ;;  %v1190_v13 = vmax.f32 %v1148_v11, %v1174_v6  ;;  %v1177_v16 = vmul.f32 0.2, %v1159_v10  ;;  %v1151_v22 = vadd.f32 %v2055_v25, %v1150_v12 }
 0x5a7   :  { %1206 = vst [vmem:[#allocation14 + $0x60] sm:$0xff] %v1190_v13  ;;  %v1193_v23 = vmax.f32 %v1159_v10, %v1177_v16  ;;  %v1175_v24 = vmul.f32 0.2, %v1151_v22 }
 0x5a9   :  { %1209 = vst [vmem:[#allocation14 + $0x78] sm:$0xff] %v1193_v23  ;;  %v1191_v26 = vmax.f32 %v1151_v22, %v1175_v24 }
 0x5ab   :  { %1207 = vst [vmem:[#allocation14 + $0x68] sm:$0xff] %v1191_v26 }
 0x5ac   :  { %1794 = shalt.err (!%p1791_p11)
}
 0x5ad   :  { %1245 = dma.vmem_to_hbm [thread:$0]  %s1240_s8, 2048, %s2089_s10, [#allocation13], %s1822_s22, %s1822_s22, %s1823_s23  }
 0x5ae   :  { %1809 = dma.done.wait [#allocation4], 2048  }
 0x5af   :  { %1810 = vsyncadd [#allocation4], 4294965248 }
 0x5b0   :  { %1811 = dma.done.wait [#allocation13], 4096  }
 0x5b1   :  { %1812 = vsyncadd [#allocation13], 4294963200 }
 0x5b2   :  { %1255 = vsyncpa [#allocation3], 1 }
 0x5b3   :  { %1256 = vsyncpa [#allocation6], 1 }
 0x5b4   :  { %1257 = vsyncpa [#allocation9], 1 }
 0x5b5   :  { %1258 = vsyncpa [#allocation4], 1 }
 0x5b6   :  { %1259 = vsyncpa [#allocation13], 1 }

</bundles_post_ra>
